<compile_context>
chip_gen: v5e
topology: v5e:2x2
jax: 0.10.0
libtpu: 0.0.40
codegen_flags: <defaults>
</compile_context>

<pallas_src>
import jax
import jax.numpy as jnp
from jax.experimental import pallas as pl
from jax.experimental.pallas import tpu as pltpu

# ---- model dimensions ------------------------------------------------------
STATE_DIM = 32
ACTION_DIM = 4
IN_DIM = STATE_DIM + ACTION_DIM     # 36
HIDDEN = 64                          # layers[-2], must be even
HALF = HIDDEN // 2                   # 32
NUM_ACTIONS = 8                      # layers[-1]
BATCH = 8


# ---- Pallas kernel: 3 fused matmuls + ReLUs --------------------------------
def dueling_q_kernel(x_ref, wa_ref, w1_ref, w2_ref, b_ref, q_ref, s_ref):
    f32 = jnp.float32
    x = x_ref[...]                                                    # (TB, 36)

    # push 1: trunk + action contribution in one N=128 MXU push
    pre = jnp.dot(x, wa_ref[...], preferred_element_type=f32)        # (TB, 128)
    h = jnp.maximum(pre[:, :HIDDEN] + b_ref[0:1, :], 0.0)            # (TB, 64) trunk ReLU
    act = pre[:, HIDDEN:]                                            # (TB, 64): [0 | action @ wa1a]

    # push 2: merged first head layer  [value-hidden | advantage-hidden]
    h1 = jnp.dot(h, w1_ref[...], preferred_element_type=f32) + act + b_ref[1:2, :]
    h1 = jnp.maximum(h1, 0.0)                                        # (TB, 64)

    # push 3: merged block-diagonal second head layer  [value | advantage | 0-pad]
    head = jnp.dot(h1, w2_ref[...], preferred_element_type=f32) + b_ref[2:3, :]  # (TB, 64)
    value = head[:, 0:1]                                             # (TB, 1)
    adv = head[:, 1:1 + NUM_ACTIONS]                                 # (TB, 8)

    q_ref[...] = value + adv                                         # mean subtracted in epilogue
    # per-tile advantage column sums (XLU reduction; slot otherwise idle)
    s_ref[...] = jnp.sum(adv, axis=0, keepdims=True)[None, :, :]     # (1, 1, 8)


# ---- wrapper: batch grid + tiny global-mean epilogue ------------------------
def dueling_q_forward(x, packed, *, tile_b=None):
    """x: (B, STATE_DIM + ACTION_DIM) float32; packed = (WA, W1, W2, Bb)."""
    WA, W1, W2, Bb = packed
    B = x.shape[0]
    if tile_b is None:
        tile_b = B if B <= 512 else 512
    assert B % tile_b == 0, "batch must be a multiple of the batch tile"
    nt = B // tile_b

    q_pre, sums = pl.pallas_call(
        dueling_q_kernel,
        out_shape=(
            jax.ShapeDtypeStruct((B, NUM_ACTIONS), jnp.float32),
            jax.ShapeDtypeStruct((nt, 1, NUM_ACTIONS), jnp.float32),
        ),
        grid_spec=pltpu.PrefetchScalarGridSpec(
            num_scalar_prefetch=0,
            grid=(nt,),
            in_specs=[
                pl.BlockSpec((tile_b, IN_DIM), lambda i: (i, 0)),        # batch tile
                pl.BlockSpec((IN_DIM, 2 * HIDDEN), lambda i: (0, 0)),    # WA, VMEM-resident
                pl.BlockSpec((HIDDEN, HIDDEN), lambda i: (0, 0)),        # W1
                pl.BlockSpec((HIDDEN, HIDDEN), lambda i: (0, 0)),        # W2
                pl.BlockSpec((3, HIDDEN), lambda i: (0, 0)),             # packed biases
            ],
            out_specs=[
                pl.BlockSpec((tile_b, NUM_ACTIONS), lambda i: (i, 0)),
                pl.BlockSpec((1, 1, NUM_ACTIONS), lambda i: (i, 0, 0)),
            ],
        ),
        compiler_params=pltpu.CompilerParams(
            dimension_semantics=("parallel",),   # v7x: shard batch tiles across both TCs
        ),
    )(x, WA, W1, W2, Bb)

    # global dueling mean: advantage.mean() over batch AND actions (matches PyTorch module)
    inv = 1.0 / float(x.shape[0] * NUM_ACTIONS)   # constant-folded reciprocal, no runtime divide
    return q_pre - jnp.sum(sums) * inv


# ---- deterministic parameter construction ----------------------------------
def make_params(key):
    ks = jax.random.split(key, 10)

    def lin(k, fan_in, fan_out, scale=0.1):
        w = scale * jax.random.normal(k, (fan_in, fan_out), jnp.float32)
        b = jnp.zeros((1, fan_out), jnp.float32)
        return w, b

    w0, b0 = lin(ks[0], STATE_DIM, HIDDEN)
    wv1, bv1 = lin(ks[1], HIDDEN, HALF)
    wv2, bv2 = lin(ks[2], HALF, 1)
    # advantage first layer operates on cat(x, action): (HIDDEN+ACTION_DIM, HALF)
    wa1 = 0.1 * jax.random.normal(ks[3], (HIDDEN + ACTION_DIM, HALF), jnp.float32)
    ba1 = jnp.zeros((1, HALF), jnp.float32)
    wa1x, wa1a = wa1[:HIDDEN, :], wa1[HIDDEN:, :]     # split of the SAME contiguous wa1
    wa2, ba2 = lin(ks[4], HALF, NUM_ACTIONS)
    # nonzero deterministic biases so they are actually exercised
    b0 = b0 + 0.01
    bv1 = bv1 + 0.02
    bv2 = bv2 + 0.03
    ba1 = ba1 + 0.04
    ba2 = ba2 + 0.05
    return (w0, b0, wv1, bv1, wv2, bv2, wa1x, wa1a, ba1, wa2, ba2)


# ---- host-side weight packing (exact algebraic rewrites, done once) ---------
def pack_params(params):
    w0, b0, wv1, bv1, wv2, bv2, wa1x, wa1a, ba1, wa2, ba2 = params

    # WA (36, 128): left half = [W0; 0] (trunk), right half = [0; wa1a] placed so the
    # action contribution lands on the advantage-hidden lanes [HALF:HIDDEN] of h1.
    WA = jnp.zeros((IN_DIM, 2 * HIDDEN), jnp.float32)
    WA = WA.at[:STATE_DIM, :HIDDEN].set(w0)
    WA = WA.at[STATE_DIM:, HIDDEN + HALF:].set(wa1a)

    # W1 (64, 64): merged first head layer [wv1 | wa1x]
    W1 = jnp.concatenate([wv1, wa1x], axis=1)

    # W2 (64, 64): block diagonal [[wv2, 0],[0, wa2]] zero-padded to 64 output lanes
    W2 = jnp.zeros((HIDDEN, HIDDEN), jnp.float32)
    W2 = W2.at[:HALF, 0:1].set(wv2)
    W2 = W2.at[HALF:, 1:1 + NUM_ACTIONS].set(wa2)

    # packed biases (3, 64): row0=b0, row1=[bv1|ba1], row2=[bv2, ba2, 0...]
    Bb = jnp.zeros((3, HIDDEN), jnp.float32)
    Bb = Bb.at[0, :].set(b0[0])
    Bb = Bb.at[1, :HALF].set(bv1[0])
    Bb = Bb.at[1, HALF:].set(ba1[0])
    Bb = Bb.at[2, 0].set(bv2[0, 0])
    Bb = Bb.at[2, 1:1 + NUM_ACTIONS].set(ba2[0])
    return WA, W1, W2, Bb


# ---- pure-JAX reference (mirrors the PyTorch forward) -----------------------
def reference_forward(x, params):
    w0, b0, wv1, bv1, wv2, bv2, wa1x, wa1a, ba1, wa2, ba2 = params
    state = x[:, :STATE_DIM]
    action = x[:, STATE_DIM:]
    h = jnp.maximum(state @ w0 + b0, 0.0)
    value = jnp.maximum(h @ wv1 + bv1, 0.0) @ wv2 + bv2
    cat = jnp.concatenate([h, action], axis=1)
    wa1 = jnp.concatenate([wa1x, wa1a], axis=0)
    adv = jnp.maximum(cat @ wa1 + ba1, 0.0) @ wa2 + ba2
    return value + adv - jnp.mean(adv)   # GLOBAL mean, exactly like advantage.mean() in torch


if __name__ == "__main__":
    key = jax.random.PRNGKey(0)
    k_x, k_p, k_x2 = jax.random.split(key, 3)
    params = make_params(k_p)
    packed = pack_params(params)

    # small demo batch (single tile, grid = (1,))
    x = jax.random.normal(k_x, (BATCH, IN_DIM), jnp.float32)
    out = jax.block_until_ready(dueling_q_forward(x, packed))
    ref = reference_forward(x, params)
    assert out.shape == (BATCH, NUM_ACTIONS)
    assert jnp.allclose(out, ref, atol=1e-4, rtol=1e-4), "mismatch vs reference (B=8)"

    # multi-tile batch exercising the grid + parallel semantics + global-mean epilogue
    B2, TILE2 = 256, 128
    x2 = jax.random.normal(k_x2, (B2, IN_DIM), jnp.float32)
    out2 = jax.block_until_ready(dueling_q_forward(x2, packed, tile_b=TILE2))
    ref2 = reference_forward(x2, params)
    assert out2.shape == (B2, NUM_ACTIONS)
    assert jnp.allclose(out2, ref2, atol=1e-4, rtol=1e-4), "mismatch vs reference (B=256)"

    print("KERNEL_OK")
</pallas_src>

<mosaic_0001>
module attributes {stable_mosaic.version = 11 : i64} {
  func.func @dueling_q_kernel(%arg0: i32, %arg1: memref<8x36xf32, #tpu.memory_space<vmem>>, %arg2: memref<36x128xf32, #tpu.memory_space<vmem>>, %arg3: memref<64x64xf32, #tpu.memory_space<vmem>>, %arg4: memref<64x64xf32, #tpu.memory_space<vmem>>, %arg5: memref<3x64xf32, #tpu.memory_space<vmem>>, %arg6: memref<8x8xf32, #tpu.memory_space<vmem>>, %arg7: memref<1x1x8xf32, #tpu.memory_space<vmem>>) attributes {dimension_semantics = [#tpu.dimension_semantics<parallel>], iteration_bounds = array<i64: 1>, scalar_prefetch = 0 : i64, scratch_operands = 0 : i64, tpu.core_type = #tpu.core_type<tc>, window_params = [{transform_indices = @transform_0, window_bounds = array<i64: 8, 36>}, {pipeline_mode = #tpu.pipeline_mode<synchronous>, transform_indices = @transform_1, window_bounds = array<i64: 36, 128>}, {pipeline_mode = #tpu.pipeline_mode<synchronous>, transform_indices = @transform_2, window_bounds = array<i64: 64, 64>}, {pipeline_mode = #tpu.pipeline_mode<synchronous>, transform_indices = @transform_3, window_bounds = array<i64: 64, 64>}, {pipeline_mode = #tpu.pipeline_mode<synchronous>, transform_indices = @transform_4, window_bounds = array<i64: 3, 64>}, {transform_indices = @transform_5, window_bounds = array<i64: 8, 8>}, {transform_indices = @transform_6, window_bounds = array<i64: 1, 1, 8>}]} {
    %c0 = arith.constant 0 : index
    %c0_0 = arith.constant 0 : index
    %0 = vector.load %arg1[%c0, %c0_0] : memref<8x36xf32, #tpu.memory_space<vmem>>, vector<8x36xf32>
    %c0_1 = arith.constant 0 : index
    %c0_2 = arith.constant 0 : index
    %1 = vector.load %arg2[%c0_1, %c0_2] : memref<36x128xf32, #tpu.memory_space<vmem>>, vector<36x128xf32>
    %cst = arith.constant dense<0.000000e+00> : vector<8x128xf32>
    %2 = tpu.matmul %0, %1, %cst {dimension_numbers = #tpu.dot_dimension_numbers<[1], [0], [0], [1], [0, 0, 1, 1], [], []>} : vector<8x36xf32>, vector<36x128xf32>, vector<8x128xf32> -> vector<8x128xf32>
    %3 = vector.extract_strided_slice %2 {offsets = [0, 0], sizes = [8, 64], strides = [1, 1]} : vector<8x128xf32> to vector<8x64xf32>
    %c0_3 = arith.constant 0 : index
    %c0_4 = arith.constant 0 : index
    %4 = vector.load %arg5[%c0_3, %c0_4] : memref<3x64xf32, #tpu.memory_space<vmem>>, vector<1x64xf32>
    %5 = vector.broadcast %4 : vector<1x64xf32> to vector<8x64xf32>
    %6 = arith.addf %3, %5 : vector<8x64xf32>
    %cst_5 = arith.constant 0.000000e+00 : f32
    %7 = vector.broadcast %cst_5 : f32 to vector<8x64xf32>
    %8 = arith.maximumf %6, %7 : vector<8x64xf32>
    %9 = vector.extract_strided_slice %2 {offsets = [0, 64], sizes = [8, 64], strides = [1, 1]} : vector<8x128xf32> to vector<8x64xf32>
    %c0_6 = arith.constant 0 : index
    %c0_7 = arith.constant 0 : index
    %10 = vector.load %arg3[%c0_6, %c0_7] : memref<64x64xf32, #tpu.memory_space<vmem>>, vector<64x64xf32>
    %cst_8 = arith.constant dense<0.000000e+00> : vector<8x64xf32>
    %11 = tpu.matmul %8, %10, %cst_8 {dimension_numbers = #tpu.dot_dimension_numbers<[1], [0], [0], [1], [0, 0, 1, 1], [], []>} : vector<8x64xf32>, vector<64x64xf32>, vector<8x64xf32> -> vector<8x64xf32>
    %12 = arith.addf %11, %9 : vector<8x64xf32>
    %c1 = arith.constant 1 : index
    %c0_9 = arith.constant 0 : index
    %13 = vector.load %arg5[%c1, %c0_9] : memref<3x64xf32, #tpu.memory_space<vmem>>, vector<1x64xf32>
    %14 = vector.broadcast %13 : vector<1x64xf32> to vector<8x64xf32>
    %15 = arith.addf %12, %14 : vector<8x64xf32>
    %cst_10 = arith.constant 0.000000e+00 : f32
    %16 = vector.broadcast %cst_10 : f32 to vector<8x64xf32>
    %17 = arith.maximumf %15, %16 : vector<8x64xf32>
    %c0_11 = arith.constant 0 : index
    %c0_12 = arith.constant 0 : index
    %18 = vector.load %arg4[%c0_11, %c0_12] : memref<64x64xf32, #tpu.memory_space<vmem>>, vector<64x64xf32>
    %cst_13 = arith.constant dense<0.000000e+00> : vector<8x64xf32>
    %19 = tpu.matmul %17, %18, %cst_13 {dimension_numbers = #tpu.dot_dimension_numbers<[1], [0], [0], [1], [0, 0, 1, 1], [], []>} : vector<8x64xf32>, vector<64x64xf32>, vector<8x64xf32> -> vector<8x64xf32>
    %c2 = arith.constant 2 : index
    %c0_14 = arith.constant 0 : index
    %20 = vector.load %arg5[%c2, %c0_14] : memref<3x64xf32, #tpu.memory_space<vmem>>, vector<1x64xf32>
    %21 = vector.broadcast %20 : vector<1x64xf32> to vector<8x64xf32>
    %22 = arith.addf %19, %21 : vector<8x64xf32>
    %23 = vector.extract_strided_slice %22 {offsets = [0, 0], sizes = [8, 1], strides = [1, 1]} : vector<8x64xf32> to vector<8x1xf32>
    %24 = vector.extract_strided_slice %22 {offsets = [0, 1], sizes = [8, 8], strides = [1, 1]} : vector<8x64xf32> to vector<8x8xf32>
    %25 = vector.broadcast %23 : vector<8x1xf32> to vector<8x8xf32>
    %26 = arith.addf %25, %24 : vector<8x8xf32>
    %c0_15 = arith.constant 0 : index
    %c0_16 = arith.constant 0 : index
    %27 = vector.load %arg6[%c0_15, %c0_16] : memref<8x8xf32, #tpu.memory_space<vmem>>, vector<8x8xf32>
    tpu.vector_store %arg6[%c0_15, %c0_16], %26 {strides = array<i32>} : memref<8x8xf32, #tpu.memory_space<vmem>>, vector<8x8xf32>,
    %cst_17 = arith.constant dense<0.000000e+00> : vector<8xf32>
    %28 = vector.multi_reduction <add>, %24, %cst_17 [0] : vector<8x8xf32> to vector<8xf32>
    %29 = vector.shape_cast %28 : vector<8xf32> to vector<1x8xf32>
    %30 = vector.shape_cast %29 : vector<1x8xf32> to vector<1x1x8xf32>
    %c0_18 = arith.constant 0 : index
    %c0_19 = arith.constant 0 : index
    %c0_20 = arith.constant 0 : index
    %31 = vector.load %arg7[%c0_18, %c0_19, %c0_20] : memref<1x1x8xf32, #tpu.memory_space<vmem>>, vector<1x1x8xf32>
    tpu.vector_store %arg7[%c0_18, %c0_19, %c0_20], %30 {strides = array<i32>} : memref<1x1x8xf32, #tpu.memory_space<vmem>>, vector<1x1x8xf32>,
    return
  }
  func.func @transform_0(%arg0: i32) -> (i32, i32) {
    %c0_i32 = arith.constant 0 : i32
    %c0_i32_0 = arith.constant 0 : i32
    return %arg0, %c0_i32 : i32, i32
  }
  func.func @transform_1(%arg0: i32) -> (i32, i32) {
    %c0_i32 = arith.constant 0 : i32
    %c0_i32_0 = arith.constant 0 : i32
    %c0_i32_1 = arith.constant 0 : i32
    return %c0_i32, %c0_i32_0 : i32, i32
  }
  func.func @transform_2(%arg0: i32) -> (i32, i32) {
    %c0_i32 = arith.constant 0 : i32
    %c0_i32_0 = arith.constant 0 : i32
    %c0_i32_1 = arith.constant 0 : i32
    return %c0_i32, %c0_i32_0 : i32, i32
  }
  func.func @transform_3(%arg0: i32) -> (i32, i32) {
    %c0_i32 = arith.constant 0 : i32
    %c0_i32_0 = arith.constant 0 : i32
    %c0_i32_1 = arith.constant 0 : i32
    return %c0_i32, %c0_i32_0 : i32, i32
  }
  func.func @transform_4(%arg0: i32) -> (i32, i32) {
    %c0_i32 = arith.constant 0 : i32
    %c0_i32_0 = arith.constant 0 : i32
    %c0_i32_1 = arith.constant 0 : i32
    return %c0_i32, %c0_i32_0 : i32, i32
  }
  func.func @transform_5(%arg0: i32) -> (i32, i32) {
    %c0_i32 = arith.constant 0 : i32
    %c0_i32_0 = arith.constant 0 : i32
    return %arg0, %c0_i32 : i32, i32
  }
  func.func @transform_6(%arg0: i32) -> (i32, i32, i32) {
    %c0_i32 = arith.constant 0 : i32
    %c0_i32_0 = arith.constant 0 : i32
    %c0_i32_1 = arith.constant 0 : i32
    return %arg0, %c0_i32, %c0_i32_0 : i32, i32, i32
  }
}

</mosaic_0001>

<bundles_post_ra>
// kernel: tpu_custom_call.1
= control target key start
LH: loop header
LB: loop body
LE: loop exit
PB: predicated region body
PF: predicated region fallthrough
CT: control target
= control target key end

     0   :  { %12 = vsyncpa [#allocation3], 0  ;;  %s538_s0 = inlined_call_operand.hbm [shape: f32[8,36], index: 0, kind: input, shape index: {}]   ;;  %s539_s1 = inlined_call_operand.hbm [shape: f32[36,128], index: 1, kind: input, shape index: {}]   ;;  %s540_s2 = inlined_call_operand.hbm [shape: f32[64,64], index: 2, kind: input, shape index: {}]   ;;  %s541_s3 = inlined_call_operand.hbm [shape: f32[64,64], index: 3, kind: input, shape index: {}]   ;;  %s542_s4 = inlined_call_operand.hbm [shape: f32[3,64], index: 4, kind: input, shape index: {}]   ;;  %s543_s5 = inlined_call_operand.hbm [shape: f32[8,8], index: 5, kind: output, shape index: {0}]   ;;  %s544_s6 = inlined_call_operand.hbm [shape: f32[1,1,8], index: 6, kind: output, shape index: {1}]  }
   0x1   :  { %13 = vsyncpa [#allocation6], 0 }
   0x2   :  { %14 = vsyncpa [#allocation9], 0 }
   0x3   :  { %15 = vsyncpa [#allocation4], 0  ;;  %s32_s23 = sshll.u32 %s539_s1, 4  ;;  %s33_s23 = int_to_ptr.hbm [resolvable:$true] %s32_s23 }
   0x4   :  { %16 = vsyncpa [#allocation13], 0  ;;  %s468_s24 = smov [#allocation5]   ;;  %s58_s28 = sshll.u32 %s541_s3, 4  ;;  %s59_s28 = int_to_ptr.hbm [resolvable:$true] %s58_s28 }
   0x5   :  { %s34_s25 = sshll.u32 %s468_s24, 4  ;;  %s469_s29 = smov 128   ;;  %s35_s25 = int_to_ptr.vmem [resolvable:$true] %s34_s25 }
   0x6   :  { %s470_s30 = smov 8   ;;  %s471_s7 = smov [#allocation8]  }
   0x7   :  { %40 = dma.hbm_to_vmem [thread:$0]  %s33_s23, 640, %s35_s25, [#allocation6], %s469_s29, %s469_s29, %s470_s30  }
   0x8   :  { %s60_s8 = sshll.u32 %s471_s7, 4  ;;  %s22_s11 = sshll.u32 %s538_s0, 4  ;;  %s61_s8 = int_to_ptr.vmem [resolvable:$true] %s60_s8  ;;  %s23_s11 = int_to_ptr.hbm [resolvable:$true] %s22_s11 }
   0x9   :  { %66 = dma.hbm_to_vmem [thread:$0]  %s59_s28, 1024, %s61_s8, [#allocation9], %s469_s29, %s469_s29, %s470_s30  }
   0xa   :  { %s45_s13 = sshll.u32 %s540_s2, 4  ;;  %s472_s14 = smov [#allocation2]   ;;  %s46_s13 = int_to_ptr.hbm [resolvable:$true] %s45_s13 }
   0xb   :  { %s24_s15 = sshll.u32 %s472_s14, 4  ;;  %s473_s3 = smov [#allocation7]   ;;  %s25_s15 = int_to_ptr.vmem [resolvable:$true] %s24_s15 }
   0xc   :  { %27 = dma.hbm_to_vmem [thread:$0]  %s23_s11, 128, %s25_s15, [#allocation3]  }
   0xd   :  { %s47_s16 = sshll.u32 %s473_s3, 4  ;;  %s72_s19 = sshll.u32 %s542_s4, 4  ;;  %s48_s16 = int_to_ptr.vmem [resolvable:$true] %s47_s16  ;;  %s73_s19 = int_to_ptr.hbm [resolvable:$true] %s72_s19 }
   0xe   :  { %53 = dma.hbm_to_vmem [thread:$0]  %s46_s13, 1024, %s48_s16, [#allocation6], %s469_s29, %s469_s29, %s470_s30  }
   0xf   :  { %s474_s0 = smov [#allocation10]  }
  0x10   :  { %s74_s20 = sshll.u32 %s474_s0, 4  ;;  %s75_s20 = int_to_ptr.vmem [resolvable:$true] %s74_s20 }
  0x11   :  { %77 = dma.hbm_to_vmem [thread:$0]  %s73_s19, 64, %s75_s20, [#allocation9]  }
  0x12   :  { %458 = dma.done.wait [#allocation3], 128  }
  0x13   :  { %459 = vsyncadd [#allocation3], 4294967168 }
  0x14   :  { %460 = dma.done.wait [#allocation6], 1664  }
  0x15   :  { %461 = vsyncadd [#allocation6], 4294965632 }
  0x16   :  { %462 = dma.done.wait [#allocation9], 1088  }
  0x17   :  { %463 = vsyncadd [#allocation9], 4294966208  ;;  %vm108_vm0 = vcmask 1043456   ;;  %v103_v0 = vld [vmem:[#allocation5 + $0x20] sm:$0xf]  ;;  %v102_v1 = vld [vmem:[#allocation5 + $0x18] sm:$0xff] }
  0x18   :  { %270 = vmatpush.msk.msra.mxu0 %vm108_vm0, %v103_v0  ;;  %v101_v2 = vld [vmem:[#allocation5 + $0x10] sm:$0xff]  ;;  %v143_v3 = vld [vmem:[#allocation7 + $0x38] sm:$0xff]  ;;  %v142_v4 = vld [vmem:[#allocation7 + $0x30] sm:$0xff]  ;;  %vm104_vm1 = vcmask 293888   ;;  %s475_s2 = smov 64   ;;  %vm148_vm2 = vcmask 523264  }
  0x19   :  { %v100_v5 = vld [vmem:[#allocation5 + $0x8] sm:$0xff]  ;;  %160 = vmatpush.msra.mxu1 %v143_v3  ;;  %v141_v6 = vld [vmem:[#allocation7 + $0x28] sm:$0xff]  ;;  %v99_v7 = vld [vmem:[#allocation5] sm:$0xff]  ;;  %v476_v32 = vmov 0   ;;  %vm221_vm3 = vcmask 72712   ;;  %s477_s4 = smov 127  }
  0x1a   :  { %124 = vmatpush.msra.mxu0 %v102_v1  ;;  %v140_v8 = vld [vmem:[#allocation7 + $0x20] sm:$0xff]  ;;  %v98_v9 = vld [vmem:[#allocation2] sm:$0xff]  ;;  %v139_v10 = vld [vmem:[#allocation7 + $0x18] sm:$0xff]  ;;  %286 = vset.pattern.permute.xlu0 %v476_v32  ;;  %s478_s21 = smov [#allocation11]   ;;  %s242_s25 = sshll.u32 %s543_s5, 4  ;;  %vm219_vm4 = vcmask 64512   ;;  %s243_s25 = int_to_ptr.hbm [resolvable:$true] %s242_s25 }
  0x1b   :  { %161 = vmatpush.msra.mxu1 %v142_v4  ;;  %v138_v11 = vld [vmem:[#allocation7 + $0x10] sm:$0xff]  ;;  %v137_v12 = vld [vmem:[#allocation7 + $0x8] sm:$0xff]  ;;  %v136_v13 = vld [vmem:[#allocation7] sm:$0xff]  ;;  %s240_s22 = sshll.u32 %s478_s21, 4  ;;  %s479_s26 = smov [#allocation12]   ;;  %vm233_vm5 = vcmask 57344   ;;  %s241_s22 = int_to_ptr.vmem [resolvable:$true] %s240_s22 }
  0x1c   :  { %125 = vmatpush.msra.mxu0 %v101_v2  ;;  %v287_v14 = vld [vmem:[#allocation10] ss:$0 sm:$0xff]  ;;  %v183_v18 = vld [vmem:[#allocation8 + $0x38] sm:$0xff]  ;;  %v182_v19 = vld [vmem:[#allocation8 + $0x30] sm:$0xff]  ;;  %s251_s27 = sshll.u32 %s479_s26, 4  ;;  %s253_s30 = sshll.u32 %s544_s6, 4  ;;  %s252_s27 = int_to_ptr.vmem [resolvable:$true] %s251_s27  ;;  %s254_s30 = int_to_ptr.hbm [resolvable:$true] %s253_s30 }
  0x1d   :  { %162 = vmatpush.msra.mxu1 %v141_v6  ;;  %197 = vmatpush.msra.mxu2 %v183_v18  ;;  %v181_v20 = vld [vmem:[#allocation8 + $0x28] sm:$0xff]  ;;  %v180_v21 = vld [vmem:[#allocation8 + $0x20] sm:$0xff]  ;;  %v179_v22 = vld [vmem:[#allocation8 + $0x18] sm:$0xff] }
  0x1e   :  { %126 = vmatpush.msra.mxu0 %v100_v5  ;;  %v178_v23 = vld [vmem:[#allocation8 + $0x10] sm:$0xff]  ;;  %v177_v24 = vld [vmem:[#allocation8 + $0x8] sm:$0xff]  ;;  %v176_v25 = vld [vmem:[#allocation8] sm:$0xff] }
  0x1f   :  { %163 = vmatpush.msra.mxu1 %v140_v8  ;;  %198 = vmatpush.msra.mxu2 %v182_v19  ;;  %v288_v26 = vld [vmem:[#allocation10 + $0x1] ss:$0 sm:$0xff]  ;;  %v289_v33 = vld [vmem:[#allocation10 + $0x2] ss:$0 sm:$0xff] }
  0x20   :  { %127 = vmatpush.msra.mxu0 %v99_v7 }
  0x21   :  { %271 = vmatmul.msk.f32.vlgmr.msra.gmra.mxu0 %vm104_vm1, %v98_v9  ;;  %164 = vmatpush.msra.mxu1 %v139_v10 }
  0x22   :  { %199 = vmatpush.msra.mxu2 %v181_v20 }
  0x23   :  { %165 = vmatpush.msra.mxu1 %v138_v11 }
  0x24   :  { %200 = vmatpush.msra.mxu2 %v180_v21 }
  0x25   :  { %166 = vmatpush.msra.mxu1 %v137_v12 }
  0x26   :  { %201 = vmatpush.msra.mxu2 %v179_v22 }
  0x27   :  { %167 = vmatpush.msra.mxu1 %v136_v13 }
  0x28   :  { %202 = vmatpush.msra.mxu2 %v178_v23 }
  0x2a   :  { %203 = vmatpush.msra.mxu2 %v177_v24 }
  0x2c   :  { %204 = vmatpush.msra.mxu2 %v176_v25 }
  0x9e   :  { %v129_v15 = vpop.f32.mrf.mxu0 }
  0x9f   :  { %v134_v16 = vadd.f32 %v287_v14, %v129_v15  ;;  %145 = vrot.lane.b32.xlu0 %v129_v15, %s475_s2 }
  0xa1   :  { %v135_v17 = vmax.f32 %v134_v16, 0.0 }
  0xa3   :  { %272 = vmatmul.msk.f32.vlgmr.msra.gmra.mxu1 %vm148_vm2, %v135_v17 }
 0x111   :  { %v146_v27 = vpop.permute.xlu0 %145 }
 0x120   :  { %v169_v28 = vpop.f32.mrf.mxu1 }
 0x121   :  { %v170_v29 = vadd.f32 %v169_v28, %v146_v27 }
 0x123   :  { %v174_v30 = vadd.f32 %v288_v26, %v170_v29 }
 0x125   :  { %v175_v31 = vmax.f32 %v174_v30, 0.0 }
 0x127   :  { %273 = vmatmul.msk.f32.vlgmr.msra.gmra.mxu2 %vm148_vm2, %v175_v31 }
 0x1aa   :  { %v206_v34 = vpop.f32.mrf.mxu2 }
 0x1ab   :  { %v207_v35 = vadd.f32 %v289_v33, %v206_v34 }
 0x1ad   :  { %211 = vperm.xlu0 %286, %v207_v35   ;;  %v222_v36 = vsel %vm221_vm3, %v207_v35, 0.0 }
 0x1ae   :  { %v223_v37 = vrot.slane %v222_v36, 4 }
 0x1b0   :  { %v224_v38 = vadd.f32 %v223_v37, %v222_v36 }
 0x1b2   :  { %v225_v39 = vrot.slane %v224_v38, 2 }
 0x1b4   :  { %v226_v42 = vadd.f32 %v225_v39, %v224_v38 }
 0x1b6   :  { %v227_v43 = vrot.slane %v226_v42, 1 }
 0x1b8   :  { %v228_v44 = vadd.f32 %v227_v43, %v226_v42 }
 0x21f   :  { %v212_v40 = vpop.permute.xlu0 %211 }
 0x220   :  { %v214_v41 = vadd.f32 %v212_v40, %v207_v35 }
 0x222   :  { %216 = vrot.lane.b32.xlu1 %v214_v41, %s477_s4 }
 0x22a   :  { %230 = vrot.lane.b32.xlu1 %v228_v44, %s477_s4 }
 0x294   :  { %v217_v45 = vpop.permute.xlu1 %216 }
 0x295   :  { %220 = vst.msk [vmem:[#allocation11] sm:$0xff] %vm219_vm4, %v217_v45 }
 0x296   :  { %245 = dma.vmem_to_hbm [thread:$0]  %s241_s22, 128, %s243_s25, [#allocation4]  }
 0x29c   :  { %v231_v46 = vpop.permute.xlu1 %230 }
 0x29d   :  { %234 = vst.msk [vmem:[#allocation12] sm:$0x1] %vm233_vm5, %v231_v46 }
 0x29e   :  { %256 = dma.vmem_to_hbm [thread:$0]  %s252_s27, 16, %s254_s30, [#allocation13]  }
 0x29f   :  { %464 = dma.done.wait [#allocation4], 128  }
 0x2a0   :  { %465 = vsyncadd [#allocation4], 4294967168 }
 0x2a1   :  { %466 = dma.done.wait [#allocation13], 16  }
 0x2a2   :  { %467 = vsyncadd [#allocation13], 4294967280 }
 0x2a3   :  { %265 = vsyncpa [#allocation3], 1 }
 0x2a4   :  { %266 = vsyncpa [#allocation6], 1 }
 0x2a5   :  { %267 = vsyncpa [#allocation9], 1 }
 0x2a6   :  { %268 = vsyncpa [#allocation4], 1 }
 0x2a7   :  { %269 = vsyncpa [#allocation13], 1 }

</bundles_post_ra>
